<compile_context>
chip_gen: v7x
topology: tpu7x:2x2x1
jax: 0.10.0
libtpu: 0.0.40
codegen_flags: <defaults>
</compile_context>

<pallas_src>
import functools
import re

import jax
import jax.numpy as jnp
from jax.experimental import pallas as pl
from jax.experimental.pallas import tpu as pltpu


def _round_up(x: int, m: int) -> int:
    return ((x + m - 1) // m) * m


def _cdiv(a: int, b: int) -> int:
    return -(-a // b)


def _tpu_generation() -> int:
    """Best-effort TPU generation from device_kind (0 if unknown)."""
    try:
        kind = jax.devices()[0].device_kind.lower()
    except Exception:
        return 0
    m = re.search(r"v(\d+)", kind)
    return int(m.group(1)) if m else 0


def _choose_row_tiling(M: int, num_cores: int, *, row_align: int = 32,
                       max_tm: int = 1024):
    """Pick (row_tile, num_tiles).

    One tile for small M on single-TC chips, a balanced split across the two
    TensorCores on v7x, and up-to-max_tm-row tiles for large M (per-grid-step
    overhead ~0.35 us dominates small tiles)."""
    M_aligned = _round_up(max(M, 1), row_align)
    n = _cdiv(M_aligned, max_tm)
    n = _round_up(n, num_cores)                       # balance across TensorCores
    tm = _round_up(_cdiv(M_aligned, n), row_align)
    n_tiles = _cdiv(M, tm)                            # last block may be partial (clipped)
    return tm, n_tiles


def _mlp_fused_kernel(x_ref, *refs, num_layers: int, compute_dtype, epilogue_dtype):
    """Fused MLP over one row tile.

    Ref layout: x_ref, (w_0, b_0, ..., w_{L-1}, b_{L-1}), o_ref
      x_ref : (TM, D0p)            activation row tile (input dtype)
      w_i   : (D_i_p, D_{i+1}_p)   weight, stored (in, out), compute_dtype
      b_i   : (1, D_{i+1}_p)       bias, float32
      o_ref : (TM, D_L_p)          output row tile (lane-dense, padded to 128)
    """
    o_ref = refs[-1]
    h = x_ref[...]
    for i in range(num_layers):
        w_ref = refs[2 * i]
        b_ref = refs[2 * i + 1]
        # MXU matmul with f32 accumulation.
        y = jnp.dot(h.astype(compute_dtype), w_ref[...],
                    preferred_element_type=jnp.float32)
        if i < num_layers - 1:
            # bias + ReLU epilogue: bf16 on v6e/v7x (bf16 VPU), f32 on v5e.
            y = y.astype(epilogue_dtype) + b_ref[...].astype(epilogue_dtype)
            h = jnp.maximum(y, 0.0)
        else:
            # Final layer: keep the bias add in f32, no activation.
            h = y + b_ref[...]
    o_ref[...] = h.astype(o_ref.dtype)


def mlp_forward(x, params, *, max_tm: int = 1024, compute_dtype=jnp.bfloat16,
                epilogue_dtype=None, num_tensorcores=None):
    """x: (..., input_dim); params: list of (w (in,out), b (out,)). Fused MLP."""
    lead_shape = x.shape[:-1]
    in_dim = x.shape[-1]
    out_dim = params[-1][0].shape[1]
    num_layers = len(params)
    out_dtype = x.dtype

    gen = _tpu_generation()
    if num_tensorcores is None:
        num_tensorcores = 2 if gen >= 7 else 1          # v7x: 2 TCs per chip
    if epilogue_dtype is None:
        epilogue_dtype = jnp.bfloat16 if gen >= 6 else jnp.float32

    x2d = x.reshape(-1, in_dim)
    M = x2d.shape[0]

    # Pad every feature dim to a lane multiple (128) -> lane-dense loads/stores.
    dims = [in_dim] + [w.shape[1] for w, _ in params]
    dims_p = [_round_up(d, 128) for d in dims]

    tm, n_tiles = _choose_row_tiling(M, num_tensorcores, row_align=32, max_tm=max_tm)

    # Input: never pad rows (Pallas clips the partial last block; rows are
    # independent so garbage tail rows stay row-local and are never written back).
    # Pad the feature dim with zeros only when in_dim is not lane-aligned.
    if dims_p[0] == in_dim:
        x_in = x2d                                     # no wrapper-side copy at all
    else:
        x_in = jnp.pad(x2d, ((0, 0), (0, dims_p[0] - in_dim)))

    flat_inputs = [x_in]
    in_specs = [pl.BlockSpec((tm, dims_p[0]), lambda i: (i, 0))]
    resident_bytes = 0
    for l, (w, b) in enumerate(params):
        d_in, d_out = w.shape
        d_in_p, d_out_p = dims_p[l], dims_p[l + 1]
        w_c = w.astype(compute_dtype)
        if (d_in_p, d_out_p) != (d_in, d_out):
            w_c = jnp.pad(w_c, ((0, d_in_p - d_in), (0, d_out_p - d_out)))
        b_c = b.astype(jnp.float32).reshape(1, d_out)
        if d_out_p != d_out:
            b_c = jnp.pad(b_c, ((0, 0), (0, d_out_p - d_out)))
        flat_inputs += [w_c, b_c]
        resident_bytes += (w_c.size * w_c.dtype.itemsize + b_c.size * 4)
        # Weights/biases are grid-invariant (constant index_map): single-buffer them
        # to halve their VMEM footprint (matters most on v7x's 64 MiB VMEM).
        # TODO(synk): for very wide layers (hidden_dim >~ 2-4K, especially on v7x)
        # tile the weight K/N dims with an "arbitrary" reduction axis + f32 VMEM
        # accumulator instead of keeping the weights fully resident.
        in_specs += [
            pl.BlockSpec((d_in_p, d_out_p), lambda i: (0, 0),
                         pipeline_mode=pl.Buffered(1)),
            pl.BlockSpec((1, d_out_p), lambda i: (0, 0),
                         pipeline_mode=pl.Buffered(1)),
        ]

    # Explicit VMEM budget: resident weights/biases + double-buffered x/out tiles.
    io_bytes = (2 * tm * dims_p[0] * x_in.dtype.itemsize
                + 2 * tm * dims_p[-1] * jnp.dtype(out_dtype).itemsize)
    vmem_limit = int(min(64 << 20, max(32 << 20, resident_bytes + io_bytes + (4 << 20))))

    kernel = functools.partial(
        _mlp_fused_kernel, num_layers=num_layers, compute_dtype=compute_dtype,
        epilogue_dtype=epilogue_dtype)

    out_p = pl.pallas_call(
        kernel,
        out_shape=jax.ShapeDtypeStruct((M, dims_p[-1]), out_dtype),
        grid_spec=pltpu.PrefetchScalarGridSpec(
            num_scalar_prefetch=0,
            grid=(n_tiles,),
            in_specs=in_specs,
            out_specs=pl.BlockSpec((tm, dims_p[-1]), lambda i: (i, 0)),
        ),
        compiler_params=pltpu.CompilerParams(
            dimension_semantics=("parallel",),
            vmem_limit_bytes=vmem_limit,
        ),
    )(*flat_inputs)

    out = out_p[:, :out_dim]
    return out.reshape(*lead_shape, out_dim)


def init_mlp_params(key, input_dim, hidden_dim, output_dim, num_layers,
                    dtype=jnp.float32):
    """Deterministic params matching nn.Linear shapes; weights stored (in, out)."""
    h = [hidden_dim] * (num_layers - 1)
    dims_in = [input_dim] + h
    dims_out = h + [output_dim]
    params = []
    for n, k in zip(dims_in, dims_out):
        key, kw, kb = jax.random.split(key, 3)
        # mimic PyTorch's uniform(-1/sqrt(fan_in), 1/sqrt(fan_in)) init
        bound = 1.0 / (n ** 0.5)
        w = jax.random.uniform(kw, (n, k), dtype=dtype, minval=-bound, maxval=bound)
        b = jax.random.uniform(kb, (k,), dtype=dtype, minval=-bound, maxval=bound)
        params.append((w, b))
    return params


def mlp_reference(x, params):
    num_layers = len(params)
    for i, (w, b) in enumerate(params):
        x = x @ w + b
        if i < num_layers - 1:
            x = jnp.maximum(x, 0.0)
    return x


if __name__ == "__main__":
    key = jax.random.PRNGKey(0)
    kx, kp, kx2, kp2 = jax.random.split(key, 4)

    # Small shapes consistent with the module.
    batch, seq = 2, 8
    input_dim, hidden_dim, output_dim, num_layers = 32, 32, 4, 3

    x = jax.random.normal(kx, (batch, seq, input_dim), dtype=jnp.float32)
    params = init_mlp_params(kp, input_dim, hidden_dim, output_dim, num_layers)

    out = jax.block_until_ready(mlp_forward(x, params))
    ref = mlp_reference(x, params)
    assert out.shape == (batch, seq, output_dim)
    # bf16 MXU inputs (+ bf16 epilogue on v6e/v7x) loosen tolerance vs the f32 reference.
    assert jnp.allclose(out, ref, atol=3e-2, rtol=3e-2), "mismatch vs reference (small)"

    # DETR-like bbox head (d_model=256, 300 queries): exercises lane-aligned input
    # (no wrapper copy), the partial last row block, and lane padding of OUT=4.
    batch2, queries = 2, 300
    d_model, out_dim2, layers2 = 256, 4, 3
    x2 = jax.random.normal(kx2, (batch2, queries, d_model), dtype=jnp.float32)
    params2 = init_mlp_params(kp2, d_model, d_model, out_dim2, layers2)
    out2 = jax.block_until_ready(mlp_forward(x2, params2))
    ref2 = mlp_reference(x2, params2)
    assert out2.shape == (batch2, queries, out_dim2)
    assert jnp.allclose(out2, ref2, atol=6e-2, rtol=6e-2), "mismatch vs reference (detr)"

    print("KERNEL_OK")
</pallas_src>

<mosaic_0001>
module attributes {stable_mosaic.version = 11 : i64} {
  func.func @_mlp_fused_kernel(%arg0: i32, %arg1: memref<32x128xf32, #tpu.memory_space<vmem>>, %arg2: memref<128x128xbf16, #tpu.memory_space<vmem>>, %arg3: memref<1x128xf32, #tpu.memory_space<vmem>>, %arg4: memref<128x128xbf16, #tpu.memory_space<vmem>>, %arg5: memref<1x128xf32, #tpu.memory_space<vmem>>, %arg6: memref<128x128xbf16, #tpu.memory_space<vmem>>, %arg7: memref<1x128xf32, #tpu.memory_space<vmem>>, %arg8: memref<32x128xf32, #tpu.memory_space<vmem>>) attributes {dimension_semantics = [#tpu.dimension_semantics<parallel>], iteration_bounds = array<i64: 1>, scalar_prefetch = 0 : i64, scratch_operands = 0 : i64, tpu.core_type = #tpu.core_type<tc>, window_params = [{transform_indices = @transform_0, window_bounds = array<i64: 32, 128>}, {pipeline_mode = #tpu.pipeline_mode<synchronous>, transform_indices = @transform_1, window_bounds = array<i64: 128, 128>}, {pipeline_mode = #tpu.pipeline_mode<synchronous>, transform_indices = @transform_2, window_bounds = array<i64: 1, 128>}, {pipeline_mode = #tpu.pipeline_mode<synchronous>, transform_indices = @transform_3, window_bounds = array<i64: 128, 128>}, {pipeline_mode = #tpu.pipeline_mode<synchronous>, transform_indices = @transform_4, window_bounds = array<i64: 1, 128>}, {pipeline_mode = #tpu.pipeline_mode<synchronous>, transform_indices = @transform_5, window_bounds = array<i64: 128, 128>}, {pipeline_mode = #tpu.pipeline_mode<synchronous>, transform_indices = @transform_6, window_bounds = array<i64: 1, 128>}, {transform_indices = @transform_7, window_bounds = array<i64: 32, 128>}]} {
    %c0 = arith.constant 0 : index
    %c0_0 = arith.constant 0 : index
    %0 = vector.load %arg1[%c0, %c0_0] : memref<32x128xf32, #tpu.memory_space<vmem>>, vector<32x128xf32>
    %1 = arith.truncf %0 : vector<32x128xf32> to vector<32x128xbf16>
    %c0_1 = arith.constant 0 : index
    %c0_2 = arith.constant 0 : index
    %2 = vector.load %arg2[%c0_1, %c0_2] : memref<128x128xbf16, #tpu.memory_space<vmem>>, vector<128x128xbf16>
    %cst = arith.constant dense<0.000000e+00> : vector<32x128xf32>
    %3 = tpu.matmul %1, %2, %cst {dimension_numbers = #tpu.dot_dimension_numbers<[1], [0], [0], [1], [0, 0, 1, 1], [], []>} : vector<32x128xbf16>, vector<128x128xbf16>, vector<32x128xf32> -> vector<32x128xf32>
    %c0_3 = arith.constant 0 : index
    %c0_4 = arith.constant 0 : index
    %4 = vector.load %arg3[%c0_3, %c0_4] : memref<1x128xf32, #tpu.memory_space<vmem>>, vector<1x128xf32>
    %5 = vector.broadcast %4 : vector<1x128xf32> to vector<32x128xf32>
    %6 = arith.addf %3, %5 : vector<32x128xf32>
    %cst_5 = arith.constant 0.000000e+00 : f32
    %7 = vector.broadcast %cst_5 : f32 to vector<32x128xf32>
    %8 = arith.maximumf %6, %7 : vector<32x128xf32>
    %9 = arith.truncf %8 : vector<32x128xf32> to vector<32x128xbf16>
    %c0_6 = arith.constant 0 : index
    %c0_7 = arith.constant 0 : index
    %10 = vector.load %arg4[%c0_6, %c0_7] : memref<128x128xbf16, #tpu.memory_space<vmem>>, vector<128x128xbf16>
    %cst_8 = arith.constant dense<0.000000e+00> : vector<32x128xf32>
    %11 = tpu.matmul %9, %10, %cst_8 {dimension_numbers = #tpu.dot_dimension_numbers<[1], [0], [0], [1], [0, 0, 1, 1], [], []>} : vector<32x128xbf16>, vector<128x128xbf16>, vector<32x128xf32> -> vector<32x128xf32>
    %c0_9 = arith.constant 0 : index
    %c0_10 = arith.constant 0 : index
    %12 = vector.load %arg5[%c0_9, %c0_10] : memref<1x128xf32, #tpu.memory_space<vmem>>, vector<1x128xf32>
    %13 = vector.broadcast %12 : vector<1x128xf32> to vector<32x128xf32>
    %14 = arith.addf %11, %13 : vector<32x128xf32>
    %cst_11 = arith.constant 0.000000e+00 : f32
    %15 = vector.broadcast %cst_11 : f32 to vector<32x128xf32>
    %16 = arith.maximumf %14, %15 : vector<32x128xf32>
    %17 = arith.truncf %16 : vector<32x128xf32> to vector<32x128xbf16>
    %c0_12 = arith.constant 0 : index
    %c0_13 = arith.constant 0 : index
    %18 = vector.load %arg6[%c0_12, %c0_13] : memref<128x128xbf16, #tpu.memory_space<vmem>>, vector<128x128xbf16>
    %cst_14 = arith.constant dense<0.000000e+00> : vector<32x128xf32>
    %19 = tpu.matmul %17, %18, %cst_14 {dimension_numbers = #tpu.dot_dimension_numbers<[1], [0], [0], [1], [0, 0, 1, 1], [], []>} : vector<32x128xbf16>, vector<128x128xbf16>, vector<32x128xf32> -> vector<32x128xf32>
    %c0_15 = arith.constant 0 : index
    %c0_16 = arith.constant 0 : index
    %20 = vector.load %arg7[%c0_15, %c0_16] : memref<1x128xf32, #tpu.memory_space<vmem>>, vector<1x128xf32>
    %21 = vector.broadcast %20 : vector<1x128xf32> to vector<32x128xf32>
    %22 = arith.addf %19, %21 : vector<32x128xf32>
    %c0_17 = arith.constant 0 : index
    %c0_18 = arith.constant 0 : index
    %23 = vector.load %arg8[%c0_17, %c0_18] : memref<32x128xf32, #tpu.memory_space<vmem>>, vector<32x128xf32>
    tpu.vector_store %arg8[%c0_17, %c0_18], %22 {strides = array<i32>} : memref<32x128xf32, #tpu.memory_space<vmem>>, vector<32x128xf32>,
    return
  }
  func.func @transform_0(%arg0: i32) -> (i32, i32) {
    %c0_i32 = arith.constant 0 : i32
    %c0_i32_0 = arith.constant 0 : i32
    return %arg0, %c0_i32 : i32, i32
  }
  func.func @transform_1(%arg0: i32) -> (i32, i32) {
    %c0_i32 = arith.constant 0 : i32
    %c0_i32_0 = arith.constant 0 : i32
    %c0_i32_1 = arith.constant 0 : i32
    return %c0_i32, %c0_i32_0 : i32, i32
  }
  func.func @transform_2(%arg0: i32) -> (i32, i32) {
    %c0_i32 = arith.constant 0 : i32
    %c0_i32_0 = arith.constant 0 : i32
    %c0_i32_1 = arith.constant 0 : i32
    return %c0_i32, %c0_i32_0 : i32, i32
  }
  func.func @transform_3(%arg0: i32) -> (i32, i32) {
    %c0_i32 = arith.constant 0 : i32
    %c0_i32_0 = arith.constant 0 : i32
    %c0_i32_1 = arith.constant 0 : i32
    return %c0_i32, %c0_i32_0 : i32, i32
  }
  func.func @transform_4(%arg0: i32) -> (i32, i32) {
    %c0_i32 = arith.constant 0 : i32
    %c0_i32_0 = arith.constant 0 : i32
    %c0_i32_1 = arith.constant 0 : i32
    return %c0_i32, %c0_i32_0 : i32, i32
  }
  func.func @transform_5(%arg0: i32) -> (i32, i32) {
    %c0_i32 = arith.constant 0 : i32
    %c0_i32_0 = arith.constant 0 : i32
    %c0_i32_1 = arith.constant 0 : i32
    return %c0_i32, %c0_i32_0 : i32, i32
  }
  func.func @transform_6(%arg0: i32) -> (i32, i32) {
    %c0_i32 = arith.constant 0 : i32
    %c0_i32_0 = arith.constant 0 : i32
    %c0_i32_1 = arith.constant 0 : i32
    return %c0_i32, %c0_i32_0 : i32, i32
  }
  func.func @transform_7(%arg0: i32) -> (i32, i32) {
    %c0_i32 = arith.constant 0 : i32
    %c0_i32_0 = arith.constant 0 : i32
    return %arg0, %c0_i32 : i32, i32
  }
}

</mosaic_0001>

<bundles_post_ra>
// kernel: tpu_custom_call.1
= control target key start
LH: loop header
LB: loop body
LE: loop exit
PB: predicated region body
PF: predicated region fallthrough
CT: control target
= control target key end

     0   :  { %12 = vsyncpa [#allocation3], 0  ;;  %s892_s0 = inlined_call_operand.hbm [shape: f32[16,128], index: 0, kind: input, shape index: {}]   ;;  %s893_s1 = inlined_call_operand.hbm [shape: bf16[128,128], index: 1, kind: input, shape index: {}]   ;;  %s894_s2 = inlined_call_operand.vmem [shape: f32[1,128], index: 2, kind: input, shape index: {}]   ;;  %s895_s3 = inlined_call_operand.hbm [shape: bf16[128,128], index: 3, kind: input, shape index: {}]   ;;  %s896_s4 = inlined_call_operand.vmem [shape: f32[1,128], index: 4, kind: input, shape index: {}]   ;;  %s897_s5 = inlined_call_operand.hbm [shape: bf16[128,128], index: 5, kind: input, shape index: {}]   ;;  %s898_s6 = inlined_call_operand.vmem [shape: f32[1,128], index: 6, kind: input, shape index: {}]   ;;  %s899_s7 = inlined_call_operand.hbm [shape: f32[16,128], index: 7, kind: output, shape index: {}]  }
   0x1   :  { %13 = vsyncpa [#allocation6], 0 }
   0x2   :  { %14 = vsyncpa [#allocation9], 0 }
   0x3   :  { %15 = vsyncpa [#allocation4], 0 }
   0x4   :  { %20 = vsyncadd [#allocation3], 256  ;;  %s752_s24 = smov [#allocation5]   ;;  %s634_s28 = scalar_lea.hbm %s893_s1, 1024 }
   0x5   :  { %s33_s25 = sshll.u32 %s752_s24, 4  ;;  %p635_p0 = scmp.ne.s32.totalorder %s893_s1, %s634_s28  ;;  %s34_s25 = int_to_ptr.vmem [resolvable:$true] %s33_s25 }
   0x6   :  { %p638_p1 = scmp.lt.u32.totalorder %s634_s28, %s893_s1 }
   0x8   :  { %p640_p2 = pnand %p638_p1, %p635_p0 }
   0xa   :  { %643 = shalt.err (!%p640_p2)
}
   0xb   :  { %s644_s10 = scalar_lea.vmem %s34_s25, 1024  ;;  %p649_p4 = scmp.lt.s32.totalorder %s34_s25, %s34_s25 }
   0xc   :  { %p645_p3 = scmp.ne.s32.totalorder %s34_s25, %s644_s10  ;;  %p650_p5 = scmp.lt.s32.totalorder %s644_s10, %s644_s10 }
   0xe   :  { %p651_p6 = por %p650_p5, %p649_p4 }
  0x10   :  { %p652_p7 = pnand %p651_p6, %p645_p3 }
  0x12   :  { %655 = shalt.err (!%p652_p7)
}
  0x13   :  { %s753_s11 = smov 64   ;;  %s754_s12 = smov 4  }
  0x14   :  { %39 = dma.hbm_to_vmem [thread:$0]  %s893_s1, 1024, %s34_s25, [#allocation6], %s753_s11, %s753_s11, %s754_s12  }
  0x15   :  { %s755_s15 = smov [#allocation2]   ;;  %s656_s19 = scalar_lea.hbm %s892_s0, 256 }
  0x16   :  { %s21_s16 = sshll.u32 %s755_s15, 4  ;;  %p657_p8 = scmp.ne.s32.totalorder %s892_s0, %s656_s19  ;;  %s22_s16 = int_to_ptr.vmem [resolvable:$true] %s21_s16 }
  0x17   :  { %p660_p9 = scmp.lt.u32.totalorder %s656_s19, %s892_s0 }
  0x19   :  { %p662_p10 = pnand %p660_p9, %p657_p8 }
  0x1b   :  { %665 = shalt.err (!%p662_p10)
}
  0x1c   :  { %s666_s24 = scalar_lea.vmem %s22_s16, 256  ;;  %s670_s1 = scalar_lea.vmem %s22_s16, 512 }
  0x1d   :  { %p667_p11 = scmp.ne.s32.totalorder %s22_s16, %s666_s24  ;;  %p671_p12 = scmp.lt.s32.totalorder %s22_s16, %s22_s16 }
  0x1e   :  { %p672_p13 = scmp.lt.s32.totalorder %s670_s1, %s666_s24 }
  0x20   :  { %p673_p0 = por %p672_p13, %p671_p12 }
  0x22   :  { %p674_p1 = pnand %p673_p0, %p667_p11 }
  0x24   :  { %677 = shalt.err (!%p674_p1)
}
  0x25   :  { %s756_s25 = smov 128   ;;  %s757_s26 = smov 8  }
  0x26   :  { %27 = dma.hbm_to_vmem [thread:$0]  %s892_s0, 256, %s22_s16, [#allocation3], %s756_s25, %s756_s25, %s757_s26  }
  0x27   :  { %s758_s29 = smov [#allocation7]   ;;  %s759_s8 = smov [#allocation8]  }
  0x28   :  { %s47_s30 = sshll.u32 %s758_s29, 4  ;;  %s61_s9 = sshll.u32 %s759_s8, 4  ;;  %s48_s30 = int_to_ptr.vmem [resolvable:$true] %s47_s30  ;;  %s831_s9 = int_to_ptr.vmem [resolvable:$true] %s61_s9 }
  0x29   :  { %s678_s14 = scalar_lea.hbm %s895_s3, 1024 }
  0x2a   :  { %p679_p2 = scmp.ne.s32.totalorder %s895_s3, %s678_s14  ;;  %p682_p3 = scmp.lt.u32.totalorder %s678_s14, %s895_s3 }
  0x2c   :  { %p684_p4 = pnand %p682_p3, %p679_p2 }
  0x2e   :  { %687 = shalt.err (!%p684_p4)
}
  0x2f   :  { %s688_s0 = scalar_lea.vmem %s48_s30, 1024  ;;  %p693_p6 = scmp.lt.s32.totalorder %s48_s30, %s48_s30 }
  0x30   :  { %p689_p5 = scmp.ne.s32.totalorder %s48_s30, %s688_s0  ;;  %p694_p7 = scmp.lt.s32.totalorder %s688_s0, %s688_s0 }
  0x32   :  { %p695_p8 = por %p694_p7, %p693_p6 }
  0x34   :  { %p696_p9 = pnand %p695_p8, %p689_p5 }
  0x36   :  { %699 = shalt.err (!%p696_p9)
}
  0x37   :  { %53 = dma.hbm_to_vmem [thread:$0]  %s895_s3, 1024, %s48_s30, [#allocation6], %s753_s11, %s753_s11, %s754_s12  }
  0x38   :  { %s700_s23 = scalar_lea.hbm %s897_s5, 1024 }
  0x39   :  { %p701_p10 = scmp.ne.s32.totalorder %s897_s5, %s700_s23  ;;  %p704_p11 = scmp.lt.u32.totalorder %s700_s23, %s897_s5 }
  0x3b   :  { %p706_p12 = pnand %p704_p11, %p701_p10 }
  0x3d   :  { %709 = shalt.err (!%p706_p12)
}
  0x3e   :  { %s710_s29 = scalar_lea.vmem %s831_s9, 1024  ;;  %p715_p0 = scmp.lt.s32.totalorder %s831_s9, %s831_s9 }
  0x3f   :  { %p711_p13 = scmp.ne.s32.totalorder %s831_s9, %s710_s29  ;;  %p716_p1 = scmp.lt.s32.totalorder %s710_s29, %s710_s29 }
  0x41   :  { %p717_p2 = por %p716_p1, %p715_p0 }
  0x43   :  { %p718_p3 = pnand %p717_p2, %p711_p13 }
  0x45   :  { %721 = shalt.err (!%p718_p3)
}
  0x46   :  { %67 = dma.hbm_to_vmem [thread:$0]  %s897_s5, 1024, %s831_s9, [#allocation9], %s753_s11, %s753_s11, %s754_s12  }
  0x47   :  { %744 = dma.done.wait [#allocation3], 512  }
  0x48   :  { %745 = vsyncadd [#allocation3], 4294966784 }
  0x49   :  { %746 = dma.done.wait [#allocation6], 2048  }
  0x4a   :  { %747 = vsyncadd [#allocation6], 4294965248 }
  0x4b   :  { %748 = dma.done.wait [#allocation9], 1024  }
  0x4c   :  { %749 = vsyncadd [#allocation9], 4294966272  ;;  %v610_v0 = vld [vmem:[#allocation5] sm:$0xff]   ;;  %v611_v1 = vld [vmem:[#allocation5 + $0x8] sm:$0xff]  }
  0x4d   :  { %541 = vmatprep.subr.bf16.mxu0 %v610_v0  ;;  %v612_v2 = vld [vmem:[#allocation5 + $0x10] sm:$0xff]   ;;  %v613_v3 = vld [vmem:[#allocation5 + $0x18] sm:$0xff]   ;;  %v83_v4 = vld [vmem:[#allocation2] sm:$0xff] }
  0x4e   :  { %542 = vmatpush3.bf16.msra.mxu0 %v610_v0  ;;  %v84_v5 = vld [vmem:[#allocation2 + $0x8] sm:$0xff]  ;;  %v618_v7 = vld [vmem:[#allocation7] sm:$0xff]   ;;  %v620_v10 = vld [vmem:[#allocation7 + $0x10] sm:$0xff]  }
  0x4f   :  { %543 = vmatprep.subr.bf16.mxu0 %v611_v1  ;;  %v87_v6 = vpack.c.bf16 %v84_v5, %v83_v4  ;;  %v619_v8 = vld [vmem:[#allocation7 + $0x8] sm:$0xff]   ;;  %v614_v9 = vld [vmem:[#allocation5 + $0x20] sm:$0xff]   ;;  %561 = vmatprep.subr.bf16.mxu1 %v618_v7  ;;  %v621_v12 = vld [vmem:[#allocation7 + $0x18] sm:$0xff]  }
  0x50   :  { %562 = vmatpush3.bf16.msra.mxu1 %v618_v7  ;;  %v615_v11 = vld [vmem:[#allocation5 + $0x28] sm:$0xff]   ;;  %v616_v13 = vld [vmem:[#allocation5 + $0x30] sm:$0xff]   ;;  %v622_v14 = vld [vmem:[#allocation7 + $0x20] sm:$0xff]  }
  0x51   :  { %557 = vmatprep.mubr.bf16.mxu0 %v87_v6  ;;  %563 = vmatprep.subr.bf16.mxu1 %v619_v8  ;;  %v617_v15 = vld [vmem:[#allocation5 + $0x38] sm:$0xff]   ;;  %v623_v16 = vld [vmem:[#allocation7 + $0x28] sm:$0xff]   ;;  %v85_v17 = vld [vmem:[#allocation2 + $0x10] sm:$0xff] }
  0x52   :  { %544 = vmatpush3.bf16.msra.mxu0 %v611_v1  ;;  %v86_v18 = vld [vmem:[#allocation2 + $0x18] sm:$0xff]  ;;  %v624_v20 = vld [vmem:[#allocation7 + $0x30] sm:$0xff]   ;;  %v626_v22 = vld [vmem:[#allocation8] sm:$0xff]  }
  0x53   :  { %545 = vmatprep.subr.bf16.mxu0 %v612_v2  ;;  %v88_v19 = vpack.c.bf16 %v86_v18, %v85_v17  ;;  %v625_v21 = vld [vmem:[#allocation7 + $0x38] sm:$0xff]   ;;  %v627_v23 = vld [vmem:[#allocation8 + $0x8] sm:$0xff]   ;;  %v628_v24 = vld [vmem:[#allocation8 + $0x10] sm:$0xff]  }
  0x54   :  { %564 = vmatpush3.bf16.msra.mxu1 %v619_v8  ;;  %v629_v25 = vld [vmem:[#allocation8 + $0x18] sm:$0xff]   ;;  %v630_v26 = vld [vmem:[#allocation8 + $0x20] sm:$0xff]   ;;  %v631_v27 = vld [vmem:[#allocation8 + $0x28] sm:$0xff]  }
  0x55   :  { %565 = vmatprep.subr.bf16.mxu1 %v620_v10  ;;  %v484_v28 = vld [vmem:[%s894_s2] ss:$0 sm:$0xff]  ;;  %v632_v43 = vld [vmem:[#allocation8 + $0x30] sm:$0xff]   ;;  %v633_v44 = vld [vmem:[#allocation8 + $0x38] sm:$0xff]  }
  0x56   :  { %546 = vmatpush3.bf16.msra.mxu0 %v612_v2  ;;  %v493_v45 = vld [vmem:[%s896_s4] ss:$0 sm:$0xff] }
  0x57   :  { %547 = vmatprep.subr.bf16.mxu0 %v613_v3  ;;  %v502_v60 = vld [vmem:[%s898_s6] ss:$0 sm:$0xff] }
  0x58   :  { %566 = vmatpush3.bf16.msra.mxu1 %v620_v10 }
  0x59   :  { %567 = vmatprep.subr.bf16.mxu1 %v621_v12 }
  0x5a   :  { %548 = vmatpush3.bf16.msra.mxu0 %v613_v3 }
  0x5b   :  { %549 = vmatprep.subr.bf16.mxu0 %v614_v9 }
  0x5c   :  { %568 = vmatpush3.bf16.msra.mxu1 %v621_v12 }
  0x5d   :  { %569 = vmatprep.subr.bf16.mxu1 %v622_v14 }
  0x5e   :  { %550 = vmatpush3.bf16.msra.mxu0 %v614_v9 }
  0x5f   :  { %551 = vmatprep.subr.bf16.mxu0 %v615_v11 }
  0x60   :  { %570 = vmatpush3.bf16.msra.mxu1 %v622_v14 }
  0x61   :  { %571 = vmatprep.subr.bf16.mxu1 %v623_v16 }
  0x62   :  { %552 = vmatpush3.bf16.msra.mxu0 %v615_v11 }
  0x63   :  { %553 = vmatprep.subr.bf16.mxu0 %v616_v13 }
  0x64   :  { %572 = vmatpush3.bf16.msra.mxu1 %v623_v16 }
  0x65   :  { %573 = vmatprep.subr.bf16.mxu1 %v624_v20 }
  0x66   :  { %554 = vmatpush3.bf16.msra.mxu0 %v616_v13 }
  0x67   :  { %555 = vmatprep.subr.bf16.mxu0 %v617_v15 }
  0x68   :  { %574 = vmatpush3.bf16.msra.mxu1 %v624_v20 }
  0x69   :  { %575 = vmatprep.subr.bf16.mxu1 %v625_v21 }
  0x6a   :  { %556 = vmatpush3.bf16.msra.mxu0 %v617_v15 }
  0x6b   :  { %581 = vmatprep.subr.bf16.mxu0 %v626_v22 }
  0x6c   :  { %576 = vmatpush3.bf16.msra.mxu1 %v625_v21 }
  0x6d   :  { %558 = vmatmul.mubr.bf16.vlgmr.msra.gmra.mrb[0].mxu0 %v88_v19 }
  0x6e   :  { %582 = vmatpush3.bf16.msra.mxu0 %v626_v22 }
  0x6f   :  { %583 = vmatprep.subr.bf16.mxu0 %v627_v23 }
  0x72   :  { %584 = vmatpush3.bf16.msra.mxu0 %v627_v23 }
  0x73   :  { %585 = vmatprep.subr.bf16.mxu0 %v628_v24 }
  0x76   :  { %586 = vmatpush3.bf16.msra.mxu0 %v628_v24 }
  0x77   :  { %587 = vmatprep.subr.bf16.mxu0 %v629_v25 }
  0x7a   :  { %588 = vmatpush3.bf16.msra.mxu0 %v629_v25 }
  0x7b   :  { %589 = vmatprep.subr.bf16.mxu0 %v630_v26 }
  0x7e   :  { %590 = vmatpush3.bf16.msra.mxu0 %v630_v26 }
  0x7f   :  { %591 = vmatprep.subr.bf16.mxu0 %v631_v27 }
  0x82   :  { %592 = vmatpush3.bf16.msra.mxu0 %v631_v27 }
  0x83   :  { %593 = vmatprep.subr.bf16.mxu0 %v632_v43 }
  0x86   :  { %594 = vmatpush3.bf16.msra.mxu0 %v632_v43 }
  0x87   :  { %595 = vmatprep.subr.bf16.mxu0 %v633_v44 }
  0x8a   :  { %596 = vmatpush3.bf16.msra.mxu0 %v633_v44 }
 0x140   :  { %v559_v29 = vpop.f32.mrb[0].mxu0 }
 0x141   :  { %v203_v30 = vadd.f32 %v559_v29, %v484_v28  ;;  %v194_v31 = vpop.f32.mrb[1].mxu0 }
 0x142   :  { %v195_v32 = vadd.f32 %v484_v28, %v194_v31  ;;  %v560_v33 = vpop.f32.mrb[2].mxu0 }
 0x143   :  { %v206_v34 = vadd.f32 %v560_v33, %v484_v28  ;;  %v197_v35 = vpop.f32.mrb[3].mxu0  ;;  %v211_v37 = vmax.f32 %v203_v30, 0.0 }
 0x144   :  { %v198_v36 = vadd.f32 %v484_v28, %v197_v35  ;;  %v209_v39 = vmax.f32 %v195_v32, 0.0 }
 0x145   :  { %v212_v38 = vmax.f32 %v206_v34, 0.0 }
 0x146   :  { %v210_v40 = vmax.f32 %v198_v36, 0.0 }
 0x147   :  { %v214_v41 = vpack.c.bf16 %v212_v38, %v211_v37 }
 0x148   :  { %v213_v42 = vpack.c.bf16 %v210_v40, %v209_v39 }
 0x14a   :  { %577 = vmatprep.mubr.bf16.mxu1 %v213_v42 }
 0x14b   :  { %578 = vmatmul.mubr.bf16.vlgmr.msra.gmra.mrb[0].mxu1 %v214_v41 }
 0x21e   :  { %v579_v46 = vpop.f32.mrb[0].mxu1 }
 0x21f   :  { %v329_v47 = vadd.f32 %v579_v46, %v493_v45  ;;  %v320_v48 = vpop.f32.mrb[1].mxu1 }
 0x220   :  { %v321_v49 = vadd.f32 %v493_v45, %v320_v48  ;;  %v580_v50 = vpop.f32.mrb[2].mxu1 }
 0x221   :  { %v332_v51 = vadd.f32 %v580_v50, %v493_v45  ;;  %v323_v52 = vpop.f32.mrb[3].mxu1  ;;  %v337_v54 = vmax.f32 %v329_v47, 0.0 }
 0x222   :  { %v324_v53 = vadd.f32 %v493_v45, %v323_v52  ;;  %v335_v56 = vmax.f32 %v321_v49, 0.0 }
 0x223   :  { %v338_v55 = vmax.f32 %v332_v51, 0.0 }
 0x224   :  { %v336_v57 = vmax.f32 %v324_v53, 0.0 }
 0x225   :  { %v340_v58 = vpack.c.bf16 %v338_v55, %v337_v54 }
 0x226   :  { %v339_v59 = vpack.c.bf16 %v336_v57, %v335_v56 }
 0x228   :  { %597 = vmatprep.mubr.bf16.mxu0 %v339_v59 }
 0x229   :  { %598 = vmatmul.mubr.bf16.vlgmr.msra.gmra.mrb[4].mxu0 %v340_v58 }
 0x2fc   :  { %v599_v61 = vpop.f32.mrb[4].mxu0 }
 0x2fd   :  { %v455_v62 = vadd.f32 %v599_v61, %v502_v60  ;;  %v446_v63 = vpop.f32.mrb[5].mxu0 }
 0x2fe   :  { %v447_v0 = vadd.f32 %v502_v60, %v446_v63  ;;  %v600_v1 = vpop.f32.mrb[6].mxu0 }
 0x2ff   :  { %463 = vst [vmem:[#allocation10 + $0x10] sm:$0xff] %v455_v62  ;;  %v458_v2 = vadd.f32 %v600_v1, %v502_v60  ;;  %v449_v3 = vpop.f32.mrb[7].mxu0 }
 0x300   :  { %461 = vst [vmem:[#allocation10] sm:$0xff] %v447_v0  ;;  %v450_v4 = vadd.f32 %v502_v60, %v449_v3 }
 0x301   :  { %464 = vst [vmem:[#allocation10 + $0x18] sm:$0xff] %v458_v2 }
 0x302   :  { %462 = vst [vmem:[#allocation10 + $0x8] sm:$0xff] %v450_v4 }
 0x303   :  { %469 = vsyncadd [#allocation4], 256  ;;  %s760_s4 = smov [#allocation10]  }
 0x304   :  { %s470_s10 = sshll.u32 %s760_s4, 4  ;;  %s471_s10 = int_to_ptr.vmem [resolvable:$true] %s470_s10 }
 0x305   :  { %s722_s13 = scalar_lea.vmem %s471_s10, 256  ;;  %s726_s14 = scalar_lea.vmem %s471_s10, 512 }
 0x306   :  { %p723_p4 = scmp.ne.s32.totalorder %s471_s10, %s722_s13  ;;  %p727_p5 = scmp.lt.s32.totalorder %s471_s10, %s471_s10 }
 0x307   :  { %p728_p6 = scmp.lt.s32.totalorder %s726_s14, %s722_s13 }
 0x309   :  { %p729_p7 = por %p728_p6, %p727_p5 }
 0x30b   :  { %p730_p8 = pnand %p729_p7, %p723_p4 }
 0x30d   :  { %733 = shalt.err (!%p730_p8)
}
 0x30e   :  { %s734_s17 = scalar_lea.hbm %s899_s7, 256 }
 0x30f   :  { %p735_p9 = scmp.ne.s32.totalorder %s899_s7, %s734_s17  ;;  %p738_p10 = scmp.lt.u32.totalorder %s734_s17, %s899_s7 }
 0x311   :  { %p740_p11 = pnand %p738_p10, %p735_p9 }
 0x313   :  { %743 = shalt.err (!%p740_p11)
}
 0x314   :  { %476 = dma.vmem_to_hbm [thread:$0]  %s471_s10, 256, %s899_s7, [#allocation4], %s756_s25, %s756_s25, %s757_s26  }
 0x315   :  { %750 = dma.done.wait [#allocation4], 512  }
 0x316   :  { %751 = vsyncadd [#allocation4], 4294966784 }
 0x317   :  { %480 = vsyncpa [#allocation3], 1 }
 0x318   :  { %481 = vsyncpa [#allocation6], 1 }
 0x319   :  { %482 = vsyncpa [#allocation9], 1 }
 0x31a   :  { %483 = vsyncpa [#allocation4], 1 }

</bundles_post_ra>
